<compile_context>
chip_gen: v5e
topology: v5e:2x2
jax: 0.10.0
libtpu: 0.0.40
codegen_flags: <defaults>
</compile_context>

<pallas_src>
import math

import jax
import jax.numpy as jnp
from jax import lax
from jax.experimental import pallas as pl
from jax.experimental.pallas import tpu as pltpu

_HIDDEN = 64


def _value_kernel(x_ref, w1_ref, b1_ref, w2_ref, b2_ref, w3t_ref, b3_ref, out_ref):
    x = x_ref[...]                                                        # [TM, S]

    # nn_layer: Linear(state_dim, 64) -> ReLU -> Linear(64, 64) -> ReLU
    h = jnp.dot(x, w1_ref[...], preferred_element_type=jnp.float32) + b1_ref[...]
    h = jnp.maximum(h, 0.0)
    h = jnp.dot(h, w2_ref[...], preferred_element_type=jnp.float32) + b2_ref[...]
    h = jnp.maximum(h, 0.0)                                               # [TM, H]

    # Critic head Linear(64, 1) as a trans-B matmul so the batch maps onto lanes:
    #   v[1, TM] = w3t[1, H] . h[TM, H]^T   (+ bias, broadcast from [1, 1])
    v = lax.dot_general(
        w3t_ref[...], h,
        dimension_numbers=(((1,), (1,)), ((), ())),
        preferred_element_type=jnp.float32,
    ) + b3_ref[...]
    out_ref[...] = v                                                      # [1, TM]


def value_model_forward(states, params, *, block_m=512):
    """states: [B, state_dim] float32. Returns value [B, 1] float32."""
    B, S = states.shape
    H = params["w1"].shape[1]

    w3t = params["w3"].T.reshape(1, H)   # [1, H]
    b3 = params["b3"].reshape(1, 1)      # [1, 1]

    # Batch tile: multiple of 8 sublanes, capped so double-buffered input tiles stay
    # well inside VMEM on every generation (v5e/v6e/v7x).
    tm = min(block_m, ((B + 7) // 8) * 8)
    n_tiles = (B + tm - 1) // tm
    b_pad = n_tiles * tm
    if b_pad != B:
        states = jnp.pad(states, ((0, b_pad - B), (0, 0)))

    const = lambda i: (0, 0)  # weights/biases resident across the whole batch grid

    out = pl.pallas_call(
        _value_kernel,
        out_shape=jax.ShapeDtypeStruct((n_tiles, 1, tm), jnp.float32),
        grid_spec=pltpu.PrefetchScalarGridSpec(
            num_scalar_prefetch=0,
            grid=(n_tiles,),
            in_specs=[
                pl.BlockSpec((tm, S), lambda i: (i, 0)),   # states tile
                pl.BlockSpec((S, H), const),               # w1
                pl.BlockSpec((1, H), const),               # b1
                pl.BlockSpec((H, H), const),               # w2
                pl.BlockSpec((1, H), const),               # b2
                pl.BlockSpec((1, H), const),               # w3^T (row vector)
                pl.BlockSpec((1, 1), const),               # b3 (scalar)
            ],
            # Lane-dense [1, TM] row per tile; leading grid dim squeezed out.
            out_specs=pl.BlockSpec((None, 1, tm), lambda i: (i, 0, 0)),
        ),
        compiler_params=pltpu.CompilerParams(
            dimension_semantics=("parallel",),  # lets v7x split the batch over 2 TCs
        ),
    )(states, params["w1"], params["b1"], params["w2"], params["b2"], w3t, b3)

    # (n_tiles, 1, tm) -> flat batch order (tile-major == row-major) -> [B, 1].
    return out.reshape(b_pad, 1)[:B]


def init_params(key, state_dim, hidden=_HIDDEN):
    """Init mimicking nn.Linear default U(-1/sqrt(fan_in), 1/sqrt(fan_in)).

    Weights stored as [in_features, out_features]; biases as [1, out_features].
    """
    def linear_init(k, fan_in, fan_out):
        kw, kb = jax.random.split(k)
        bound = 1.0 / math.sqrt(fan_in)
        w = jax.random.uniform(kw, (fan_in, fan_out), jnp.float32, -bound, bound)
        b = jax.random.uniform(kb, (1, fan_out), jnp.float32, -bound, bound)
        return w, b

    k1, k2, k3 = jax.random.split(key, 3)
    w1, b1 = linear_init(k1, state_dim, hidden)
    w2, b2 = linear_init(k2, hidden, hidden)
    w3, b3 = linear_init(k3, hidden, 1)
    return dict(w1=w1, b1=b1, w2=w2, b2=b2, w3=w3, b3=b3)


def reference_forward(states, p):
    h = jnp.maximum(states @ p["w1"] + p["b1"], 0.0)
    h = jnp.maximum(h @ p["w2"] + p["b2"], 0.0)
    return h @ p["w3"] + p["b3"]


if __name__ == "__main__":
    key = jax.random.PRNGKey(0)
    k_params, k_states = jax.random.split(key)

    batch = 8
    state_dim = 32
    action_dim = 8  # present in the PyTorch __init__ signature but unused by Value_Model

    params = init_params(k_params, state_dim)
    states = jax.random.normal(k_states, (batch, state_dim), jnp.float32)

    value = value_model_forward(states, params)
    jax.block_until_ready(value)

    # Sanity check against pure-JAX reference.
    ref_value = reference_forward(states, params)
    assert value.shape == (batch, 1)
    assert jnp.allclose(value, ref_value, atol=1e-5, rtol=1e-5)

    # Batch that needs padding (not a multiple of the tile).
    states_odd = jax.random.normal(jax.random.PRNGKey(1), (13, state_dim), jnp.float32)
    value_odd = value_model_forward(states_odd, params)
    jax.block_until_ready(value_odd)
    assert value_odd.shape == (13, 1)
    assert jnp.allclose(value_odd, reference_forward(states_odd, params), atol=1e-5, rtol=1e-5)

    # Batch spanning multiple tiles (exercises the grid + resident weights).
    states_big = jax.random.normal(jax.random.PRNGKey(2), (1030, state_dim), jnp.float32)
    value_big = value_model_forward(states_big, params)
    jax.block_until_ready(value_big)
    assert value_big.shape == (1030, 1)
    assert jnp.allclose(value_big, reference_forward(states_big, params), atol=1e-5, rtol=1e-5)

    print("KERNEL_OK")
</pallas_src>

<mosaic_0001>
module attributes {stable_mosaic.version = 11 : i64} {
  func.func @_value_kernel(%arg0: i32, %arg1: memref<8x32xf32, #tpu.memory_space<vmem>>, %arg2: memref<32x64xf32, #tpu.memory_space<vmem>>, %arg3: memref<1x64xf32, #tpu.memory_space<vmem>>, %arg4: memref<64x64xf32, #tpu.memory_space<vmem>>, %arg5: memref<1x64xf32, #tpu.memory_space<vmem>>, %arg6: memref<1x64xf32, #tpu.memory_space<vmem>>, %arg7: memref<1x1xf32, #tpu.memory_space<vmem>>, %arg8: memref<1x1x8xf32, #tpu.memory_space<vmem>>) attributes {dimension_semantics = [#tpu.dimension_semantics<parallel>], iteration_bounds = array<i64: 1>, scalar_prefetch = 0 : i64, scratch_operands = 0 : i64, tpu.core_type = #tpu.core_type<tc>, window_params = [{transform_indices = @transform_0, window_bounds = array<i64: 8, 32>}, {pipeline_mode = #tpu.pipeline_mode<synchronous>, transform_indices = @transform_1, window_bounds = array<i64: 32, 64>}, {pipeline_mode = #tpu.pipeline_mode<synchronous>, transform_indices = @transform_2, window_bounds = array<i64: 1, 64>}, {pipeline_mode = #tpu.pipeline_mode<synchronous>, transform_indices = @transform_3, window_bounds = array<i64: 64, 64>}, {pipeline_mode = #tpu.pipeline_mode<synchronous>, transform_indices = @transform_4, window_bounds = array<i64: 1, 64>}, {pipeline_mode = #tpu.pipeline_mode<synchronous>, transform_indices = @transform_5, window_bounds = array<i64: 1, 64>}, {pipeline_mode = #tpu.pipeline_mode<synchronous>, transform_indices = @transform_6, window_bounds = array<i64: 1, 1>}, {transform_indices = @transform_7, window_bounds = array<i64: 1, 1, 8>}]} {
    %c0 = arith.constant 0 : index
    %c0_0 = arith.constant 0 : index
    %0 = vector.load %arg1[%c0, %c0_0] : memref<8x32xf32, #tpu.memory_space<vmem>>, vector<8x32xf32>
    %c0_1 = arith.constant 0 : index
    %c0_2 = arith.constant 0 : index
    %1 = vector.load %arg2[%c0_1, %c0_2] : memref<32x64xf32, #tpu.memory_space<vmem>>, vector<32x64xf32>
    %cst = arith.constant dense<0.000000e+00> : vector<8x64xf32>
    %2 = tpu.matmul %0, %1, %cst {dimension_numbers = #tpu.dot_dimension_numbers<[1], [0], [0], [1], [0, 0, 1, 1], [], []>} : vector<8x32xf32>, vector<32x64xf32>, vector<8x64xf32> -> vector<8x64xf32>
    %c0_3 = arith.constant 0 : index
    %c0_4 = arith.constant 0 : index
    %3 = vector.load %arg3[%c0_3, %c0_4] : memref<1x64xf32, #tpu.memory_space<vmem>>, vector<1x64xf32>
    %4 = vector.broadcast %3 : vector<1x64xf32> to vector<8x64xf32>
    %5 = arith.addf %2, %4 : vector<8x64xf32>
    %cst_5 = arith.constant 0.000000e+00 : f32
    %6 = vector.broadcast %cst_5 : f32 to vector<8x64xf32>
    %7 = arith.maximumf %5, %6 : vector<8x64xf32>
    %c0_6 = arith.constant 0 : index
    %c0_7 = arith.constant 0 : index
    %8 = vector.load %arg4[%c0_6, %c0_7] : memref<64x64xf32, #tpu.memory_space<vmem>>, vector<64x64xf32>
    %cst_8 = arith.constant dense<0.000000e+00> : vector<8x64xf32>
    %9 = tpu.matmul %7, %8, %cst_8 {dimension_numbers = #tpu.dot_dimension_numbers<[1], [0], [0], [1], [0, 0, 1, 1], [], []>} : vector<8x64xf32>, vector<64x64xf32>, vector<8x64xf32> -> vector<8x64xf32>
    %c0_9 = arith.constant 0 : index
    %c0_10 = arith.constant 0 : index
    %10 = vector.load %arg5[%c0_9, %c0_10] : memref<1x64xf32, #tpu.memory_space<vmem>>, vector<1x64xf32>
    %11 = vector.broadcast %10 : vector<1x64xf32> to vector<8x64xf32>
    %12 = arith.addf %9, %11 : vector<8x64xf32>
    %cst_11 = arith.constant 0.000000e+00 : f32
    %13 = vector.broadcast %cst_11 : f32 to vector<8x64xf32>
    %14 = arith.maximumf %12, %13 : vector<8x64xf32>
    %c0_12 = arith.constant 0 : index
    %c0_13 = arith.constant 0 : index
    %15 = vector.load %arg6[%c0_12, %c0_13] : memref<1x64xf32, #tpu.memory_space<vmem>>, vector<1x64xf32>
    %cst_14 = arith.constant dense<0.000000e+00> : vector<1x8xf32>
    %16 = tpu.matmul %15, %14, %cst_14 {dimension_numbers = #tpu.dot_dimension_numbers<[1], [1], [0], [0], [0, 0, 1, 0], [], []>} : vector<1x64xf32>, vector<8x64xf32>, vector<1x8xf32> -> vector<1x8xf32>
    %c0_15 = arith.constant 0 : index
    %c0_16 = arith.constant 0 : index
    %17 = vector.load %arg7[%c0_15, %c0_16] : memref<1x1xf32, #tpu.memory_space<vmem>>, vector<1x1xf32>
    %18 = vector.broadcast %17 : vector<1x1xf32> to vector<1x8xf32>
    %19 = arith.addf %16, %18 : vector<1x8xf32>
    %c0_17 = arith.constant 0 : index
    %c0_18 = arith.constant 0 : index
    %c0_19 = arith.constant 0 : index
    %20 = vector.load %arg8[%c0_17, %c0_18, %c0_19] : memref<1x1x8xf32, #tpu.memory_space<vmem>>, vector<1x1x8xf32>
    %21 = vector.shape_cast %20 : vector<1x1x8xf32> to vector<1x8xf32>
    %22 = vector.shape_cast %19 : vector<1x8xf32> to vector<1x1x8xf32>
    tpu.vector_store %arg8[%c0_17, %c0_18, %c0_19], %22 {strides = array<i32>} : memref<1x1x8xf32, #tpu.memory_space<vmem>>, vector<1x1x8xf32>,
    return
  }
  func.func @transform_0(%arg0: i32) -> (i32, i32) {
    %c0_i32 = arith.constant 0 : i32
    %c0_i32_0 = arith.constant 0 : i32
    return %arg0, %c0_i32 : i32, i32
  }
  func.func @transform_1(%arg0: i32) -> (i32, i32) {
    %c0_i32 = arith.constant 0 : i32
    %c0_i32_0 = arith.constant 0 : i32
    %c0_i32_1 = arith.constant 0 : i32
    return %c0_i32, %c0_i32_0 : i32, i32
  }
  func.func @transform_2(%arg0: i32) -> (i32, i32) {
    %c0_i32 = arith.constant 0 : i32
    %c0_i32_0 = arith.constant 0 : i32
    %c0_i32_1 = arith.constant 0 : i32
    return %c0_i32, %c0_i32_0 : i32, i32
  }
  func.func @transform_3(%arg0: i32) -> (i32, i32) {
    %c0_i32 = arith.constant 0 : i32
    %c0_i32_0 = arith.constant 0 : i32
    %c0_i32_1 = arith.constant 0 : i32
    return %c0_i32, %c0_i32_0 : i32, i32
  }
  func.func @transform_4(%arg0: i32) -> (i32, i32) {
    %c0_i32 = arith.constant 0 : i32
    %c0_i32_0 = arith.constant 0 : i32
    %c0_i32_1 = arith.constant 0 : i32
    return %c0_i32, %c0_i32_0 : i32, i32
  }
  func.func @transform_5(%arg0: i32) -> (i32, i32) {
    %c0_i32 = arith.constant 0 : i32
    %c0_i32_0 = arith.constant 0 : i32
    %c0_i32_1 = arith.constant 0 : i32
    return %c0_i32, %c0_i32_0 : i32, i32
  }
  func.func @transform_6(%arg0: i32) -> (i32, i32) {
    %c0_i32 = arith.constant 0 : i32
    %c0_i32_0 = arith.constant 0 : i32
    %c0_i32_1 = arith.constant 0 : i32
    return %c0_i32, %c0_i32_0 : i32, i32
  }
  func.func @transform_7(%arg0: i32) -> (i32, i32, i32) {
    %c0_i32 = arith.constant 0 : i32
    %c0_i32_0 = arith.constant 0 : i32
    %c0_i32_1 = arith.constant 0 : i32
    return %arg0, %c0_i32, %c0_i32_0 : i32, i32, i32
  }
}

</mosaic_0001>

<bundles_post_ra>
// kernel: tpu_custom_call.1
= control target key start
LH: loop header
LB: loop body
LE: loop exit
PB: predicated region body
PF: predicated region fallthrough
CT: control target
= control target key end

     0   :  { %s386_s0 = inlined_call_operand.hbm [shape: f32[8,32], index: 0, kind: input, shape index: {}]   ;;  %s387_s1 = inlined_call_operand.hbm [shape: f32[32,64], index: 1, kind: input, shape index: {}]   ;;  %s388_s2 = inlined_call_operand.vmem [shape: f32[1,64], index: 2, kind: input, shape index: {}]   ;;  %s389_s3 = inlined_call_operand.hbm [shape: f32[64,64], index: 3, kind: input, shape index: {}]   ;;  %s390_s4 = inlined_call_operand.vmem [shape: f32[1,64], index: 4, kind: input, shape index: {}]   ;;  %s391_s5 = inlined_call_operand.vmem [shape: f32[1,64], index: 5, kind: input, shape index: {}]   ;;  %s392_s6 = inlined_call_operand.<no memory space> [shape: f32[1,1], index: 6, kind: input, shape index: {}]   ;;  %s393_s7 = inlined_call_operand.hbm [shape: f32[1,1,8], index: 7, kind: output, shape index: {}]  }
   0x1   :  { %v12_v0 = vstv %s392_s6 }
   0x2   :  { %13 = vst [vmem:[#allocation2] sm:$0x1] %v12_v0 }
   0x3   :  { %14 = vsyncpa [#allocation4], 0 }
   0x4   :  { %15 = vsyncpa [#allocation7], 0  ;;  %s32_s28 = sshll.u32 %s387_s1, 4  ;;  %s33_s28 = int_to_ptr.hbm [resolvable:$true] %s32_s28 }
   0x5   :  { %16 = vsyncpa [#allocation5], 0  ;;  %s315_s29 = smov [#allocation6]   ;;  %s22_s10 = sshll.u32 %s386_s0, 4  ;;  %s23_s10 = int_to_ptr.hbm [resolvable:$true] %s22_s10 }
   0x6   :  { %s34_s30 = sshll.u32 %s315_s29, 4  ;;  %s316_s11 = smov 128   ;;  %s35_s30 = int_to_ptr.vmem [resolvable:$true] %s34_s30 }
   0x7   :  { %s317_s12 = smov 8   ;;  %s318_s6 = smov [#allocation3]  }
   0x8   :  { %40 = dma.hbm_to_vmem [thread:$0]  %s33_s28, 512, %s35_s30, [#allocation7], %s316_s11, %s316_s11, %s317_s12  }
   0x9   :  { %s24_s13 = sshll.u32 %s318_s6, 4  ;;  %s47_s16 = sshll.u32 %s389_s3, 4  ;;  %s25_s13 = int_to_ptr.vmem [resolvable:$true] %s24_s13  ;;  %s48_s16 = int_to_ptr.hbm [resolvable:$true] %s47_s16 }
   0xa   :  { %27 = dma.hbm_to_vmem [thread:$0]  %s23_s10, 128, %s25_s13, [#allocation4]  }
   0xb   :  { %s319_s1 = smov [#allocation8]  }
   0xc   :  { %s49_s17 = sshll.u32 %s319_s1, 4  ;;  %s50_s17 = int_to_ptr.vmem [resolvable:$true] %s49_s17 }
   0xd   :  { %55 = dma.hbm_to_vmem [thread:$0]  %s48_s16, 1024, %s50_s17, [#allocation7], %s316_s11, %s316_s11, %s317_s12  }
   0xe   :  { %309 = dma.done.wait [#allocation4], 128  }
   0xf   :  { %310 = vsyncadd [#allocation4], 4294967168 }
  0x10   :  { %311 = dma.done.wait [#allocation7], 1536  }
  0x11   :  { %312 = vsyncadd [#allocation7], 4294965760  ;;  %v78_v1 = vld [vmem:[#allocation6 + $0x18] sm:$0xff]  ;;  %v77_v2 = vld [vmem:[#allocation6 + $0x10] sm:$0xff]  ;;  %vm83_vm0 = vcmask 261120   ;;  %vm120_vm1 = vcmask 523264  }
  0x12   :  { %99 = vmatpush.msra.mxu0 %v78_v1  ;;  %v115_v3 = vld [vmem:[#allocation8 + $0x38] sm:$0xff]  ;;  %v76_v4 = vld [vmem:[#allocation6 + $0x8] sm:$0xff]  ;;  %v114_v5 = vld [vmem:[#allocation8 + $0x30] sm:$0xff]  ;;  %v320_v19 = vmov 0   ;;  %s188_s25 = sshll.u32 %s393_s7, 4  ;;  %vm179_vm2 = vcmask 57344   ;;  %s189_s25 = int_to_ptr.hbm [resolvable:$true] %s188_s25 }
  0x13   :  { %132 = vmatpush.msra.mxu1 %v115_v3  ;;  %v113_v6 = vld [vmem:[#allocation8 + $0x28] sm:$0xff]  ;;  %v75_v7 = vld [vmem:[#allocation6] sm:$0xff]  ;;  %v74_v8 = vld [vmem:[#allocation3] sm:$0xff]  ;;  %210 = vset.pattern.permute.xlu0 %v320_v19 }
  0x14   :  { %100 = vmatpush.msra.mxu0 %v77_v2  ;;  %v112_v9 = vld [vmem:[#allocation8 + $0x20] sm:$0xff]  ;;  %v111_v10 = vld [vmem:[#allocation8 + $0x18] sm:$0xff]  ;;  %v110_v11 = vld [vmem:[#allocation8 + $0x10] sm:$0xff] }
  0x15   :  { %133 = vmatpush.msra.mxu1 %v114_v5  ;;  %v109_v12 = vld [vmem:[#allocation8 + $0x8] sm:$0xff]  ;;  %v108_v13 = vld [vmem:[#allocation8] sm:$0xff]  ;;  %v211_v14 = vld [vmem:[%s388_s2] ss:$0 sm:$0xff]  ;;  %s321_s2 = smov [#allocation9]  }
  0x16   :  { %101 = vmatpush.msra.mxu0 %v76_v4  ;;  %v146_v18 = vld [vmem:[#allocation2] sm:$0x1]  ;;  %s186_s22 = sshll.u32 %s321_s2, 4  ;;  %s187_s22 = int_to_ptr.vmem [resolvable:$true] %s186_s22 }
  0x17   :  { %134 = vmatpush.msra.mxu1 %v113_v6  ;;  %149 = vperm.xlu0 %210, %v146_v18   ;;  %v212_v20 = vld [vmem:[%s390_s4] ss:$0 sm:$0xff] }
  0x18   :  { %102 = vmatpush.msra.mxu0 %v75_v7  ;;  %v145_v24 = vld [vmem:[%s391_s5] sm:$0x1] }
  0x19   :  { %199 = vmatmul.msk.f32.vlgmr.msra.gmra.mxu0 %vm83_vm0, %v74_v8  ;;  %135 = vmatpush.msra.mxu1 %v112_v9 }
  0x1b   :  { %136 = vmatpush.msra.mxu1 %v111_v10 }
  0x1d   :  { %137 = vmatpush.msra.mxu1 %v110_v11 }
  0x1f   :  { %138 = vmatpush.msra.mxu1 %v109_v12 }
  0x21   :  { %139 = vmatpush.msra.mxu1 %v108_v13 }
  0x89   :  { %v150_v25 = vpop.permute.xlu0 %149 }
  0x8a   :  { %v152_v26 = vperm.slane %v150_v25, 0 }
  0x96   :  { %v104_v15 = vpop.f32.mrf.mxu0 }
  0x97   :  { %v105_v16 = vadd.f32 %v211_v14, %v104_v15 }
  0x99   :  { %v107_v17 = vmax.f32 %v105_v16, 0.0 }
  0x9b   :  { %200 = vmatmul.msk.f32.vlgmr.msra.gmra.mxu1 %vm120_vm1, %v107_v17 }
 0x118   :  { %v141_v21 = vpop.f32.mrf.mxu1 }
 0x119   :  { %v142_v22 = vadd.f32 %v212_v20, %v141_v21 }
 0x11b   :  { %v144_v23 = vmax.f32 %v142_v22, 0.0 }
 0x11d   :  { %201 = vmatpush.xpose.msk.msra.mxu2 %vm120_vm1, %v144_v23 }
 0x120   :  { %202 = vmatmul.msk.f32.vlgmr.msra.gmra.mxu2 %vm120_vm1, %v145_v24 }
 0x1a3   :  { %v176_v27 = vpop.f32.mrf.mxu2 }
 0x1a4   :  { %v177_v28 = vadd.f32 %v176_v27, %v152_v26 }
 0x1a6   :  { %180 = vst.msk [vmem:[#allocation9] sm:$0x1] %vm179_vm2, %v177_v28 }
 0x1a7   :  { %191 = dma.vmem_to_hbm [thread:$0]  %s187_s22, 16, %s189_s25, [#allocation5]  }
 0x1a8   :  { %313 = dma.done.wait [#allocation5], 16  }
 0x1a9   :  { %314 = vsyncadd [#allocation5], 4294967280 }
 0x1aa   :  { %196 = vsyncpa [#allocation4], 1 }
 0x1ab   :  { %197 = vsyncpa [#allocation7], 1 }
 0x1ac   :  { %198 = vsyncpa [#allocation5], 1 }

</bundles_post_ra>
